<compile_context>
chip_gen: v7x
topology: tpu7x:2x2x1
jax: 0.10.0
libtpu: 0.0.40
codegen_flags: <defaults>
</compile_context>

<pallas_src>
import functools
import math

import jax
import jax.numpy as jnp
from jax import lax
from jax.experimental import pallas as pl
from jax.experimental.pallas import tpu as pltpu


def _make_pe(emb_size: int, max_len: int = 100) -> jnp.ndarray:
    """Sinusoidal positional-encoding table, shape (1, max_len, E)."""
    position = jnp.arange(0, max_len, dtype=jnp.float32)[:, None]          # (L, 1)
    div_term = jnp.exp(
        jnp.arange(0, emb_size, 2, dtype=jnp.float32)
        * (-math.log(10000.0) / emb_size)
    )                                                                       # (E//2,)
    pe = jnp.zeros((max_len, emb_size), dtype=jnp.float32)
    pe = pe.at[:, 0::2].set(jnp.sin(position * div_term))
    pe = pe.at[:, 1::2].set(jnp.cos(position * div_term))
    return pe[None, :, :]                                                   # (1, L, E)


_TARGET_BLOCK_BYTES = 2 << 20   # ~2 MiB per buffer -> safe on v5e/v6e/v7x defaults


def _choose_tiles(n_rows: int, n_cols: int, itemsize: int):
    """Pick (row_tile, col_tile) for a (n_rows, n_cols) elementwise stream."""
    # Lane (last) dim: full extent if small, else a multiple of 128.
    if n_cols * itemsize <= _TARGET_BLOCK_BYTES or n_cols < 128:
        tc = n_cols
    else:
        tc = max(128, (min(n_cols, _TARGET_BLOCK_BYTES // itemsize) // 128) * 128)
    # Sublane (second-to-last) dim: full extent or a multiple of 8.
    rows_budget = max(1, _TARGET_BLOCK_BYTES // max(1, tc * itemsize))
    if n_rows <= max(8, rows_budget):
        tr = n_rows
    else:
        tr = max(8, (min(n_rows, rows_budget) // 8) * 8)
    return tr, tc


def _posenc_kernel(seed_ref, x_ref, pe_ref, o_ref, *,
                   p: float, training: bool,
                   tile_rows: int, tile_cols: int, n_cols: int):
    # x_ref/o_ref: (tile_rows, tile_cols); pe_ref: (1, tile_cols); seed_ref: SMEM (1,)
    y = x_ref[...] + pe_ref[...]                       # broadcast add over rows
    if training and p > 0.0:
        cb = pl.program_id(0)                          # column-tile index (outer)
        rb = pl.program_id(1)                          # row/batch-tile index (inner)
        seed = seed_ref[0].astype(jnp.uint32)

        # Global element coordinates -> stateless counter-based hash (splitmix32-ish).
        row0 = (rb * tile_rows).astype(jnp.uint32)
        col0 = (cb * tile_cols).astype(jnp.uint32)
        rows = lax.broadcasted_iota(jnp.int32, y.shape, 0).astype(jnp.uint32) + row0
        cols = lax.broadcasted_iota(jnp.int32, y.shape, 1).astype(jnp.uint32) + col0
        h = rows * jnp.uint32(n_cols) + cols
        h = h ^ (seed * jnp.uint32(0x9E3779B9))
        h = (h ^ (h >> 16)) * jnp.uint32(0x7FEB352D)
        h = (h ^ (h >> 15)) * jnp.uint32(0x846CA68B)
        h = h ^ (h >> 16)

        # keep iff uniform-uint32 >= p * 2^32  (unsigned compare, no float convert)
        thresh = jnp.uint32(min(int(round(p * 4294967296.0)), 4294967295))
        keep = h >= thresh
        scale = jnp.asarray(1.0 / (1.0 - p), dtype=y.dtype)   # compile-time constant
        o_ref[...] = jnp.where(keep, y * scale, jnp.zeros_like(y)).astype(o_ref.dtype)
    else:
        o_ref[...] = y.astype(o_ref.dtype)


def positional_encoding(x: jnp.ndarray,
                        pe: jnp.ndarray,
                        seed: int = 0,
                        p: float = 0.1,
                        training: bool = True) -> jnp.ndarray:
    """x: (B, S, E).  pe: (1, max_len, E).  Returns dropout(x + pe[:, :S, :])."""
    B, S, E = x.shape
    F = S * E                                                  # lane-dense flat feature dim
    x_flat = x.reshape(B, F)
    pe_flat = pe[:, :S, :].astype(x.dtype).reshape(1, F)
    seed_arr = jnp.array([seed], dtype=jnp.int32)

    tb, tc = _choose_tiles(B, F, x.dtype.itemsize)
    nb = pl.cdiv(B, tb)
    nc = pl.cdiv(F, tc)

    kernel = functools.partial(_posenc_kernel,
                               p=float(p), training=bool(training),
                               tile_rows=tb, tile_cols=tc, n_cols=F)

    out_flat = pl.pallas_call(
        kernel,
        out_shape=jax.ShapeDtypeStruct((B, F), x.dtype),
        grid_spec=pltpu.PrefetchScalarGridSpec(
            num_scalar_prefetch=1,
            grid=(nc, nb),                                     # batch tiles innermost:
            in_specs=[                                         #  pe block index constant there
                pl.BlockSpec((tb, tc), lambda c, b, seed: (b, c)),   # x
                pl.BlockSpec((1, tc), lambda c, b, seed: (0, c)),    # pe (broadcast over rows)
            ],
            out_specs=pl.BlockSpec((tb, tc), lambda c, b, seed: (b, c)),
        ),
        compiler_params=pltpu.CompilerParams(
            dimension_semantics=("parallel", "parallel"),       # no stateful RNG -> fully parallel
        ),
    )(seed_arr, x_flat, pe_flat)

    return out_flat.reshape(B, S, E)


if __name__ == "__main__":
    B, S, E = 2, 8, 32
    max_len = 100
    p_drop = 0.1

    key = jax.random.PRNGKey(0)
    x = jax.random.normal(key, (B, S, E), dtype=jnp.float32)
    pe = _make_pe(E, max_len)

    ref = x + pe[:, :S, :]

    # Eval mode (deterministic): out == x + pe[:, :S, :]
    out_eval = jax.block_until_ready(
        positional_encoding(x, pe, seed=0, p=p_drop, training=False))
    assert out_eval.shape == (B, S, E)
    assert jnp.allclose(out_eval, ref, atol=1e-6), "eval-mode mismatch"

    # Train mode: dropout mask computed inside the kernel.
    out_train = jax.block_until_ready(
        positional_encoding(x, pe, seed=123, p=p_drop, training=True))
    assert out_train.shape == (B, S, E)
    scaled = ref / (1.0 - p_drop)
    close = jnp.isclose(out_train, scaled, atol=1e-5)
    zero = jnp.isclose(out_train, 0.0, atol=1e-6)
    assert bool(jnp.all(close | zero)), "train-mode dropout values inconsistent"
    drop_frac = float(jnp.mean((zero & ~close).astype(jnp.float32)))
    assert drop_frac < 0.5, "dropout rate looks wrong"

    print("KERNEL_OK")
</pallas_src>

<mosaic_0001>
module attributes {stable_mosaic.version = 11 : i64} {
  func.func @_posenc_kernel(%arg0: i32, %arg1: i32, %arg2: memref<1xi32, #tpu.memory_space<smem>>, %arg3: memref<2x256xf32, #tpu.memory_space<vmem>>, %arg4: memref<1x256xf32, #tpu.memory_space<vmem>>, %arg5: memref<2x256xf32, #tpu.memory_space<vmem>>) attributes {dimension_semantics = [#tpu.dimension_semantics<parallel>, #tpu.dimension_semantics<parallel>], iteration_bounds = array<i64: 1, 1>, scalar_prefetch = 1 : i64, scratch_operands = 0 : i64, tpu.core_type = #tpu.core_type<tc>, window_params = [{transform_indices = @transform_0, window_bounds = array<i64: 2, 256>}, {transform_indices = @transform_1, window_bounds = array<i64: 1, 256>}, {transform_indices = @transform_2, window_bounds = array<i64: 2, 256>}]} {
    %c0 = arith.constant 0 : index
    %c0_0 = arith.constant 0 : index
    %0 = vector.load %arg3[%c0, %c0_0] : memref<2x256xf32, #tpu.memory_space<vmem>>, vector<2x256xf32>
    %c0_1 = arith.constant 0 : index
    %c0_2 = arith.constant 0 : index
    %1 = vector.load %arg4[%c0_1, %c0_2] : memref<1x256xf32, #tpu.memory_space<vmem>>, vector<1x256xf32>
    %2 = vector.broadcast %1 : vector<1x256xf32> to vector<2x256xf32>
    %3 = arith.addf %0, %2 : vector<2x256xf32>
    %c0_3 = arith.constant 0 : index
    %c0_4 = arith.constant 0 : index
    %4 = vector.load %arg5[%c0_3, %c0_4] : memref<2x256xf32, #tpu.memory_space<vmem>>, vector<2x256xf32>
    tpu.vector_store %arg5[%c0_3, %c0_4], %3 {strides = array<i32>} : memref<2x256xf32, #tpu.memory_space<vmem>>, vector<2x256xf32>,
    return
  }
  func.func @transform_0(%arg0: i32, %arg1: i32, %arg2: memref<1xi32, #tpu.memory_space<smem>>) -> (i32, i32) {
    %c0_i32 = arith.constant 0 : i32
    return %arg1, %arg0 : i32, i32
  }
  func.func @transform_1(%arg0: i32, %arg1: i32, %arg2: memref<1xi32, #tpu.memory_space<smem>>) -> (i32, i32) {
    %c0_i32 = arith.constant 0 : i32
    %c0_i32_0 = arith.constant 0 : i32
    return %c0_i32, %arg0 : i32, i32
  }
  func.func @transform_2(%arg0: i32, %arg1: i32, %arg2: memref<1xi32, #tpu.memory_space<smem>>) -> (i32, i32) {
    %c0_i32 = arith.constant 0 : i32
    return %arg1, %arg0 : i32, i32
  }
}

</mosaic_0001>

<bundles_post_ra>
// kernel: tpu_custom_call.1
= control target key start
LH: loop header
LB: loop body
LE: loop exit
PB: predicated region body
PF: predicated region fallthrough
CT: control target
= control target key end

     0   :  { %9 = vsyncpa [#allocation5], 0  ;;  %s164_s0 = inlined_call_operand.<no memory space> [shape: s32[1], index: 0, kind: input, shape index: {}]   ;;  %s165_s1 = inlined_call_operand.hbm [shape: f32[2,256], index: 1, kind: input, shape index: {}]   ;;  %s166_s2 = inlined_call_operand.vmem [shape: f32[1,256], index: 2, kind: input, shape index: {}]   ;;  %s167_s3 = inlined_call_operand.hbm [shape: f32[2,256], index: 3, kind: output, shape index: {}]  }
   0x1   :  { %10 = vsyncpa [#allocation6], 0  ;;  %s114_s12 = smov [#allocation4]   ;;  %s66_s16 = scalar_lea.hbm %s165_s1, 64 }
   0x2   :  { %s17_s13 = sshll.u32 %s114_s12, 4  ;;  %p67_p0 = scmp.ne.s32.totalorder %s165_s1, %s66_s16  ;;  %s18_s13 = int_to_ptr.vmem [resolvable:$true] %s17_s13 }
   0x3   :  { %p70_p1 = scmp.lt.u32.totalorder %s66_s16, %s165_s1 }
   0x5   :  { %p72_p2 = pnand %p70_p1, %p67_p0 }
   0x7   :  { %75 = shalt.err (!%p72_p2)
}
   0x8   :  { %s76_s20 = scalar_lea.vmem %s18_s13, 64  ;;  %p81_p4 = scmp.lt.s32.totalorder %s18_s13, %s18_s13 }
   0x9   :  { %p77_p3 = scmp.ne.s32.totalorder %s18_s13, %s76_s20  ;;  %p82_p5 = scmp.lt.s32.totalorder %s76_s20, %s76_s20 }
   0xb   :  { %p83_p6 = por %p82_p5, %p81_p4 }
   0xd   :  { %p84_p7 = pnand %p83_p6, %p77_p3 }
   0xf   :  { %87 = shalt.err (!%p84_p7)
}
  0x10   :  { %20 = dma.hbm_to_vmem [thread:$0]  %s165_s1, 64, %s18_s13, [#allocation5]  }
  0x11   :  { %110 = dma.done.wait [#allocation5], 64  }
  0x12   :  { %111 = vsyncadd [#allocation5], 4294967232  ;;  %v29_v0 = vlaneseq  ;;  %v115_v1 = vmov 1983009808   ;;  %v27_v7 = vld [vmem:[%s166_s2] sm:$0x3] }
  0x13   :  { %v39_v2 = vunpack.c.l.s4 %v115_v1  ;;  %v26_v12 = vld [vmem:[#allocation4] sm:$0xf]  ;;  %s116_s25 = smov [#allocation7]  }
  0x14   :  { %v30_v3 = vshrl.u32 %v29_v0, 7  ;;  %s54_s1 = sshll.u32 %s116_s25, 4  ;;  %s55_s1 = int_to_ptr.vmem [resolvable:$true] %s54_s1 }
  0x15   :  { %v40_v6 = vunpack.c.0.s8 %v39_v2  ;;  %s88_s26 = scalar_lea.vmem %s55_s1, 64  ;;  %p93_p9 = scmp.lt.s32.totalorder %s55_s1, %s55_s1 }
  0x16   :  { %v31_v4 = vsub.s32 0, %v30_v3  ;;  %v35_v5 = vsub.s32 1, %v30_v3  ;;  %p89_p8 = scmp.ne.s32.totalorder %s55_s1, %s88_s26  ;;  %p94_p10 = scmp.lt.s32.totalorder %s88_s26, %s88_s26 }
  0x17   :  { %v43_v10 = vsub.s32 %v40_v6, %v30_v3 }
  0x18   :  { %v32_v8 = vrot.slane %v27_v7, %v31_v4  ;;  %v36_v9 = vrot.slane %v27_v7, %v35_v5  ;;  %p95_p11 = por %p94_p10, %p93_p9 }
  0x1a   :  { %v37_v11 = vcombine.low %v32_v8, %v36_v9  ;;  %p96_p12 = pnand %p95_p11, %p89_p8 }
  0x1c   :  { %v44_v13 = vrot.slane %v37_v11, %v43_v10 }
  0x1e   :  { %v46_v14 = vadd.f32 %v44_v13, %v26_v12 }
  0x20   :  { %47 = vst [vmem:[#allocation7] sm:$0xf] %v46_v14 }
  0x21   :  { %99 = shalt.err (!%p96_p12)
}
  0x22   :  { %s100_s28 = scalar_lea.hbm %s167_s3, 64 }
  0x23   :  { %p101_p13 = scmp.ne.s32.totalorder %s167_s3, %s100_s28  ;;  %p104_p0 = scmp.lt.u32.totalorder %s100_s28, %s167_s3 }
  0x25   :  { %p106_p1 = pnand %p104_p0, %p101_p13 }
  0x27   :  { %109 = shalt.err (!%p106_p1)
}
  0x28   :  { %57 = dma.vmem_to_hbm [thread:$0]  %s55_s1, 64, %s167_s3, [#allocation6]  }
  0x29   :  { %112 = dma.done.wait [#allocation6], 64  }
  0x2a   :  { %113 = vsyncadd [#allocation6], 4294967232 }
  0x2b   :  { %61 = vsyncpa [#allocation5], 1 }
  0x2c   :  { %62 = vsyncpa [#allocation6], 1 }

</bundles_post_ra>
